<compile_context>
chip_gen: v7x
topology: tpu7x:2x2x1
jax: 0.10.0
libtpu: 0.0.40
codegen_flags: <defaults>
</compile_context>

<pallas_src>
import functools

import jax
import jax.numpy as jnp
import numpy as np
from jax import lax
from jax.experimental import pallas as pl
from jax.experimental.pallas import tpu as pltpu

# Box channel indices (SparseDrive convention).
X, Y, Z = 0, 1, 2
SIN_YAW, COS_YAW = 6, 7
CNS, YNS = 0, 1

BOX_LOSS_WEIGHT = 0.25
CNS_LOSS_WEIGHT = 1.0
YNS_LOSS_WEIGHT = 1.0
_FOCAL_EPS = 1e-12   # GaussianFocalLoss eps
_COS_EPS = 1e-8      # reference cosine-similarity clamp (sign-preserving -> unused in kernel)


# --------------------------------------------------------------------------------------
# Kernel-side helpers
# --------------------------------------------------------------------------------------
def _tile_contrib(slab_ref, col0, *, D, QC, n_valid, has_reverse):
    """Per-lane loss contributions for one (R, TN) slab tile -> (3, TN)."""
    tn = slab_ref.shape[-1]
    row = lambda r: slab_ref[r:r + 1, :]                       # (1, TN) lane-dense row

    # ---- weighted-L1 box loss: per-lane sum over the D channel rows ----------------
    b = slab_ref[0:D, :]
    t = slab_ref[D:2 * D, :]
    w = slab_ref[2 * D:3 * D, :]
    l1 = jnp.sum(jnp.abs(b - t) * w, axis=0, keepdims=True)   # (1, TN)

    b_sin, b_cos = row(SIN_YAW), row(COS_YAW)
    t_sin, t_cos = row(D + SIN_YAW), row(D + COS_YAW)
    # sign-only cosine similarity: reference denominator max(|a||b|, eps) > 0, so
    # sign(dot) == sign(cos_sim) exactly -> drop the sqrt/div entirely.
    dot = t_sin * b_sin + t_cos * b_cos                        # (1, TN)

    if has_reverse:
        w_sin, w_cos = row(2 * D + SIN_YAW), row(2 * D + COS_YAW)
        allow = row(3 * D + QC)          # precomputed isin() mask, 0 in padded lanes
        # Padded lanes: allow == 0 AND dot == 0 -> if_rev is False there by construction.
        if_rev = (allow > 0.5) & (dot < 0.0)
        # L1 correction from flipping only the two yaw target rows.
        corr = ((jnp.abs(b_sin + t_sin) - jnp.abs(b_sin - t_sin)) * w_sin
                + (jnp.abs(b_cos + t_cos) - jnp.abs(b_cos - t_cos)) * w_cos)
        l1 = l1 + jnp.where(if_rev, corr, 0.0)
        # Post-flip dot sign (flip negates both sin & cos, norms unchanged).
        dot = jnp.where(if_rev, -dot, dot)

    # ---- validity mask for lanes padded up to a multiple of TN ---------------------
    col = lax.broadcasted_iota(jnp.int32, (1, tn), 1) + col0
    valid = (col < n_valid).astype(jnp.float32)

    # ---- centerness loss: BCE-with-logits vs exp(-||dxyz||) ------------------------
    dx = row(D + X) - row(X)
    dy = row(D + Y) - row(Y)
    dz = row(D + Z) - row(Z)
    cns_t = jnp.exp(-jnp.sqrt(dx * dx + dy * dy + dz * dz))
    cns = row(3 * D + CNS)                                     # logits
    bce = (jnp.maximum(cns, 0.0) - cns * cns_t
           + jnp.log1p(jnp.exp(-jnp.abs(cns)))) * valid

    # ---- yawness loss: Gaussian focal (alpha=2, gamma=4), target in {0,1} ----------
    # Select BEFORE the log: one log instead of two, unused-branch muls disappear.
    p = jax.nn.sigmoid(row(3 * D + YNS))
    pos_mask = dot > 0.0
    log_arg = jnp.where(pos_mask, p, 1.0 - p) + _FOCAL_EPS
    wsel = jnp.where(pos_mask, 1.0 - p, p)
    yns = -jnp.log(log_arg) * (wsel * wsel) * valid

    return jnp.concatenate([l1, bce, yns], axis=0)             # (3, TN)


def _scale_rows(sums, avg):
    """Apply per-loss weights and 1/avg_factor to the (3, 1) partial sums."""
    # NOTE: avg_factor == 0 yields inf/nan, same as the PyTorch reference (precondition).
    inv_avg = 1.0 / avg
    rowi = lax.broadcasted_iota(jnp.int32, (3, 1), 0)
    scale = jnp.where(rowi == 0, BOX_LOSS_WEIGHT,
                      jnp.where(rowi == 1, CNS_LOSS_WEIGHT, YNS_LOSS_WEIGHT))
    return sums * (scale * inv_avg)


def _single_step_kernel(avg_ref, slab_ref, out_ref, *, D, QC, n_valid, has_reverse):
    """Fast path: whole problem fits one tile -> no scratch, no init/finalize round-trip."""
    contrib = _tile_contrib(slab_ref, 0, D=D, QC=QC, n_valid=n_valid,
                            has_reverse=has_reverse)
    sums = jnp.sum(contrib, axis=1, keepdims=True)             # (3, 1)
    out_ref[...] = _scale_rows(sums, avg_ref[0]).reshape(1, 3, 1)


def _multi_step_kernel(avg_ref, slab_ref, out_ref, acc_ref, *, D, QC, n_valid, has_reverse):
    """Grid (num_cores, steps): per-lane partials in VMEM scratch, finalize on last step."""
    c = pl.program_id(0)
    j = pl.program_id(1)
    steps = pl.num_programs(1)
    tn = slab_ref.shape[-1]

    @pl.when(j == 0)
    def _init():
        acc_ref[...] = jnp.zeros_like(acc_ref)

    col0 = (c * steps + j) * tn
    # One combined (3, TN) update instead of three sub-row read-modify-writes.
    acc_ref[...] = acc_ref[...] + _tile_contrib(
        slab_ref, col0, D=D, QC=QC, n_valid=n_valid, has_reverse=has_reverse)

    @pl.when(j == steps - 1)
    def _finalize():
        sums = jnp.sum(acc_ref[...], axis=1, keepdims=True)    # (3, 1)
        out_ref[...] = _scale_rows(sums, avg_ref[0]).reshape(1, 3, 1)


# --------------------------------------------------------------------------------------
# Wrapper
# --------------------------------------------------------------------------------------
def _round_up(x, m):
    return (x + m - 1) // m * m


@functools.partial(jax.jit, static_argnames=("cls_allow_reverse", "lane_tile", "num_cores"))
def sparse_box3d_loss(box, box_target, weight, quality, cls_target, avg_factor,
                      cls_allow_reverse=(5, 6), lane_tile=8192, num_cores=1):
    """SparseBox3DLoss forward. Inputs (..., D)/( ..., QC)/(...,); returns 3 scalar losses.

    num_cores > 1 adds a leading "parallel" grid axis (useful for v7x's 2 TensorCores at
    large N); per-core partials are summed in the wrapper. Harmless on 1-TC chips.
    """
    D = int(box.shape[-1])
    QC = int(quality.shape[-1])
    n = int(np.prod(box.shape[:-1]))
    has_reverse = (cls_allow_reverse is not None) and (cls_target is not None)

    # Lane tile: big enough to amortize per-grid-step overhead (~0.35us) against the single
    # fused DMA; capped at 16384 so double-buffered slab (+ (3,TN) scratch) stays well under
    # the default scoped-VMEM limit on every generation (v5e 16MiB; v6e/v7x 32MiB scoped).
    lane_tile = int(min(max(int(lane_tile), 128), 16384))
    tn = min(lane_tile, _round_up(max(n, 1), 128))

    # ---- build the fused channel-major slab (single concat + transpose + pad pass) ----
    # TODO(synk): ideally the producer emits this channel-major slab directly so this extra
    #             HBM pass disappears; here it is one fused pass under jit instead of five.
    def flat(x, last):
        return x.reshape(-1, last).astype(jnp.float32)

    parts = [flat(box, D), flat(box_target, D), flat(weight, D), flat(quality, QC)]
    if has_reverse:
        cls = cls_target.reshape(-1).astype(jnp.int32)
        allow = cls == jnp.int32(int(cls_allow_reverse[0]))
        for c in cls_allow_reverse[1:]:                        # torch.isin, hoisted
            allow = allow | (cls == jnp.int32(int(c)))
        parts.append(allow.astype(jnp.float32).reshape(-1, 1))
    slab = jnp.transpose(jnp.concatenate(parts, axis=-1))      # (R, n) channel-major
    R = int(slab.shape[0])                                     # 3*D + QC (+1)

    steps_total = _round_up(max(n, 1), tn) // tn
    avg = jnp.reshape(jnp.asarray(avg_factor, jnp.float32), (1,))

    if steps_total <= 1:
        n_pad = tn
        slab = jnp.pad(slab, ((0, 0), (0, n_pad - n)))         # zero-padded lanes
        kernel = functools.partial(_single_step_kernel, D=D, QC=QC, n_valid=n,
                                   has_reverse=has_reverse)
        out = pl.pallas_call(
            kernel,
            out_shape=jax.ShapeDtypeStruct((1, 3, 1), jnp.float32),
            grid_spec=pltpu.PrefetchScalarGridSpec(
                num_scalar_prefetch=1,
                grid=(1,),
                in_specs=[pl.BlockSpec((R, tn), lambda i, *_: (0, 0))],
                out_specs=pl.BlockSpec((1, 3, 1), lambda i, *_: (0, 0, 0)),
            ),
            compiler_params=pltpu.CompilerParams(dimension_semantics=("arbitrary",)),
        )(avg, slab)
    else:
        nc = max(1, min(int(num_cores), steps_total))
        n_pad = _round_up(n, tn * nc)
        slab = jnp.pad(slab, ((0, 0), (0, n_pad - n)))
        steps_per_core = n_pad // (tn * nc)
        kernel = functools.partial(_multi_step_kernel, D=D, QC=QC, n_valid=n,
                                   has_reverse=has_reverse)
        out = pl.pallas_call(
            kernel,
            out_shape=jax.ShapeDtypeStruct((nc, 3, 1), jnp.float32),
            grid_spec=pltpu.PrefetchScalarGridSpec(
                num_scalar_prefetch=1,
                grid=(nc, steps_per_core),
                in_specs=[pl.BlockSpec(
                    (R, tn), lambda c, j, *_: (0, c * steps_per_core + j))],
                out_specs=pl.BlockSpec((1, 3, 1), lambda c, j, *_: (c, 0, 0)),
                scratch_shapes=[pltpu.VMEM((3, tn), jnp.float32)],
            ),
            compiler_params=pltpu.CompilerParams(
                dimension_semantics=("parallel", "arbitrary")),
        )(avg, slab)

    totals = jnp.sum(out, axis=0)                              # sum per-core partials
    return {"loss_box": totals[0, 0], "loss_cns": totals[1, 0], "loss_yns": totals[2, 0]}


# --------------------------------------------------------------------------------------
# Pure-JAX reference (mirrors the PyTorch forward with the fixed sub-losses)
# --------------------------------------------------------------------------------------
def _reference(box, box_target, weight, quality, cls_target, avg_factor, cls_allow_reverse):
    D = box.shape[-1]
    b = box.reshape(-1, D).astype(jnp.float32)
    t = box_target.reshape(-1, D).astype(jnp.float32)
    w = weight.reshape(-1, D).astype(jnp.float32)
    q = quality.reshape(-1, quality.shape[-1]).astype(jnp.float32)
    c = cls_target.reshape(-1).astype(jnp.int32)

    def cos_sim(a, bb):
        dot = jnp.sum(a * bb, axis=-1)
        return dot / jnp.maximum(jnp.linalg.norm(a, axis=-1) * jnp.linalg.norm(bb, axis=-1),
                                 _COS_EPS)

    yaw_t = t[:, [SIN_YAW, COS_YAW]]
    yaw_b = b[:, [SIN_YAW, COS_YAW]]
    if cls_allow_reverse is not None:
        if_rev = cos_sim(yaw_t, yaw_b) < 0
        allow = jnp.isin(c, jnp.asarray(cls_allow_reverse, jnp.int32))
        if_rev = allow & if_rev
        yaw_t = jnp.where(if_rev[:, None], -yaw_t, yaw_t)
        t = t.at[:, [SIN_YAW, COS_YAW]].set(yaw_t)

    box_loss = jnp.sum(jnp.abs(b - t) * w) / avg_factor * BOX_LOSS_WEIGHT

    cns = q[:, CNS]
    yns_p = jax.nn.sigmoid(q[:, YNS])
    cns_target = jnp.exp(-jnp.linalg.norm(t[:, [X, Y, Z]] - b[:, [X, Y, Z]], axis=-1))
    bce = jnp.maximum(cns, 0.0) - cns * cns_target + jnp.log1p(jnp.exp(-jnp.abs(cns)))
    cns_loss = jnp.sum(bce) / avg_factor * CNS_LOSS_WEIGHT

    yns_t = (cos_sim(yaw_t, yaw_b) > 0).astype(jnp.float32)
    pos = -jnp.log(yns_p + _FOCAL_EPS) * (1 - yns_p) ** 2 * (yns_t == 1.0)
    neg = -jnp.log(1 - yns_p + _FOCAL_EPS) * yns_p ** 2 * (1 - yns_t) ** 4
    yns_loss = jnp.sum(pos + neg) / avg_factor * YNS_LOSS_WEIGHT

    return {"loss_box": box_loss, "loss_cns": cns_loss, "loss_yns": yns_loss}


# --------------------------------------------------------------------------------------
if __name__ == "__main__":
    key = jax.random.PRNGKey(0)
    kb, kt, kw, kq, kc = jax.random.split(key, 5)
    allow_cls = (5, 6)

    # Small-shape demo (single-tile fast path).
    B, NQ, D = 2, 8, 10  # batch, queries, box channels
    box = jax.random.normal(kb, (B, NQ, D), jnp.float32)
    box_target = jax.random.normal(kt, (B, NQ, D), jnp.float32)
    weight = jax.random.uniform(kw, (B, NQ, D), jnp.float32)
    quality = jax.random.normal(kq, (B, NQ, 2), jnp.float32)
    cls_target = jax.random.randint(kc, (B, NQ), 0, 10, dtype=jnp.int32)
    avg_factor = float(B * NQ)

    out = sparse_box3d_loss(box, box_target, weight, quality, cls_target, avg_factor,
                            cls_allow_reverse=allow_cls)
    out = jax.tree_util.tree_map(jax.block_until_ready, out)
    ref = _reference(box, box_target, weight, quality, cls_target, avg_factor, allow_cls)
    for k in out:
        np.testing.assert_allclose(np.asarray(out[k]), np.asarray(ref[k]),
                                   rtol=1e-4, atol=1e-5)

    # Exercise the multi-step accumulator grid and the optional 2-core split path
    # (still small shapes; lane_tile is shrunk to force several grid steps).
    B2, NQ2 = 2, 320
    k2 = jax.random.split(jax.random.PRNGKey(1), 5)
    box2 = jax.random.normal(k2[0], (B2, NQ2, D), jnp.float32)
    tgt2 = jax.random.normal(k2[1], (B2, NQ2, D), jnp.float32)
    w2 = jax.random.uniform(k2[2], (B2, NQ2, D), jnp.float32)
    q2 = jax.random.normal(k2[3], (B2, NQ2, 2), jnp.float32)
    c2 = jax.random.randint(k2[4], (B2, NQ2), 0, 10, dtype=jnp.int32)
    af2 = float(B2 * NQ2)
    ref2 = _reference(box2, tgt2, w2, q2, c2, af2, allow_cls)
    for ncores in (1, 2):
        out2 = sparse_box3d_loss(box2, tgt2, w2, q2, c2, af2, cls_allow_reverse=allow_cls,
                                 lane_tile=128, num_cores=ncores)
        out2 = jax.tree_util.tree_map(jax.block_until_ready, out2)
        for k in out2:
            np.testing.assert_allclose(np.asarray(out2[k]), np.asarray(ref2[k]),
                                       rtol=1e-4, atol=1e-5)

    print("KERNEL_OK")
</pallas_src>

<mosaic_0001>
module attributes {stable_mosaic.version = 11 : i64} {
  func.func @_single_step_kernel(%arg0: i32, %arg1: memref<1xf32, #tpu.memory_space<smem>>, %arg2: memref<33x128xf32, #tpu.memory_space<vmem>>, %arg3: memref<1x3x1xf32, #tpu.memory_space<vmem>>) attributes {dimension_semantics = [#tpu.dimension_semantics<arbitrary>], iteration_bounds = array<i64: 1>, scalar_prefetch = 1 : i64, scratch_operands = 0 : i64, tpu.core_type = #tpu.core_type<tc>, window_params = [{pipeline_mode = #tpu.pipeline_mode<synchronous>, transform_indices = @transform_0, window_bounds = array<i64: 33, 128>}, {pipeline_mode = #tpu.pipeline_mode<synchronous>, transform_indices = @transform_1, window_bounds = array<i64: 1, 3, 1>}]} {
    %c0 = arith.constant 0 : index
    %c0_0 = arith.constant 0 : index
    %0 = vector.load %arg2[%c0, %c0_0] : memref<33x128xf32, #tpu.memory_space<vmem>>, vector<10x128xf32>
    %c10 = arith.constant 10 : index
    %c0_1 = arith.constant 0 : index
    %1 = vector.load %arg2[%c10, %c0_1] : memref<33x128xf32, #tpu.memory_space<vmem>>, vector<10x128xf32>
    %c20 = arith.constant 20 : index
    %c0_2 = arith.constant 0 : index
    %2 = vector.load %arg2[%c20, %c0_2] : memref<33x128xf32, #tpu.memory_space<vmem>>, vector<10x128xf32>
    %3 = arith.subf %0, %1 : vector<10x128xf32>
    %4 = math.absf %3 : vector<10x128xf32>
    %5 = arith.mulf %4, %2 : vector<10x128xf32>
    %cst = arith.constant dense<0.000000e+00> : vector<128xf32>
    %6 = vector.multi_reduction <add>, %5, %cst [0] : vector<10x128xf32> to vector<128xf32>
    %7 = vector.shape_cast %6 : vector<128xf32> to vector<1x128xf32>
    %c6 = arith.constant 6 : index
    %c0_3 = arith.constant 0 : index
    %8 = vector.load %arg2[%c6, %c0_3] : memref<33x128xf32, #tpu.memory_space<vmem>>, vector<1x128xf32>
    %c7 = arith.constant 7 : index
    %c0_4 = arith.constant 0 : index
    %9 = vector.load %arg2[%c7, %c0_4] : memref<33x128xf32, #tpu.memory_space<vmem>>, vector<1x128xf32>
    %c16 = arith.constant 16 : index
    %c0_5 = arith.constant 0 : index
    %10 = vector.load %arg2[%c16, %c0_5] : memref<33x128xf32, #tpu.memory_space<vmem>>, vector<1x128xf32>
    %c17 = arith.constant 17 : index
    %c0_6 = arith.constant 0 : index
    %11 = vector.load %arg2[%c17, %c0_6] : memref<33x128xf32, #tpu.memory_space<vmem>>, vector<1x128xf32>
    %12 = arith.mulf %10, %8 : vector<1x128xf32>
    %13 = arith.mulf %11, %9 : vector<1x128xf32>
    %14 = arith.addf %12, %13 : vector<1x128xf32>
    %c26 = arith.constant 26 : index
    %c0_7 = arith.constant 0 : index
    %15 = vector.load %arg2[%c26, %c0_7] : memref<33x128xf32, #tpu.memory_space<vmem>>, vector<1x128xf32>
    %c27 = arith.constant 27 : index
    %c0_8 = arith.constant 0 : index
    %16 = vector.load %arg2[%c27, %c0_8] : memref<33x128xf32, #tpu.memory_space<vmem>>, vector<1x128xf32>
    %c32 = arith.constant 32 : index
    %c0_9 = arith.constant 0 : index
    %17 = vector.load %arg2[%c32, %c0_9] : memref<33x128xf32, #tpu.memory_space<vmem>>, vector<1x128xf32>
    %cst_10 = arith.constant 5.000000e-01 : f32
    %18 = vector.broadcast %cst_10 : f32 to vector<1x128xf32>
    %19 = arith.cmpf ogt, %17, %18 : vector<1x128xf32>
    %cst_11 = arith.constant 0.000000e+00 : f32
    %20 = vector.broadcast %cst_11 : f32 to vector<1x128xf32>
    %21 = arith.cmpf olt, %14, %20 : vector<1x128xf32>
    %22 = arith.andi %19, %21 : vector<1x128xi1>
    %23 = arith.addf %8, %10 : vector<1x128xf32>
    %24 = math.absf %23 : vector<1x128xf32>
    %25 = arith.subf %8, %10 : vector<1x128xf32>
    %26 = math.absf %25 : vector<1x128xf32>
    %27 = arith.subf %24, %26 : vector<1x128xf32>
    %28 = arith.mulf %27, %15 : vector<1x128xf32>
    %29 = arith.addf %9, %11 : vector<1x128xf32>
    %30 = math.absf %29 : vector<1x128xf32>
    %31 = arith.subf %9, %11 : vector<1x128xf32>
    %32 = math.absf %31 : vector<1x128xf32>
    %33 = arith.subf %30, %32 : vector<1x128xf32>
    %34 = arith.mulf %33, %16 : vector<1x128xf32>
    %35 = arith.addf %28, %34 : vector<1x128xf32>
    %cst_12 = arith.constant 0.000000e+00 : f32
    %36 = vector.broadcast %cst_12 : f32 to vector<1x128xf32>
    %37 = arith.select %22, %35, %36 : vector<1x128xi1>, vector<1x128xf32>
    %38 = arith.addf %7, %37 : vector<1x128xf32>
    %cst_13 = arith.constant 0.000000e+00 : f32
    %39 = vector.broadcast %cst_13 : f32 to vector<1x128xf32>
    %40 = arith.subf %39, %14 : vector<1x128xf32>
    %41 = arith.select %22, %40, %14 : vector<1x128xi1>, vector<1x128xf32>
    %42 = tpu.iota {dimensions = array<i32: 1>} : vector<1x128xi32>
    %c0_i32 = arith.constant 0 : i32
    %43 = vector.broadcast %c0_i32 : i32 to vector<1x128xi32>
    %44 = arith.addi %42, %43 : vector<1x128xi32>
    %c16_i32 = arith.constant 16 : i32
    %45 = vector.broadcast %c16_i32 : i32 to vector<1x128xi32>
    %46 = arith.cmpi slt, %44, %45 : vector<1x128xi32>
    %47 = arith.extui %46 : vector<1x128xi1> to vector<1x128xi32>
    %48 = arith.sitofp %47 : vector<1x128xi32> to vector<1x128xf32>
    %c10_14 = arith.constant 10 : index
    %c0_15 = arith.constant 0 : index
    %49 = vector.load %arg2[%c10_14, %c0_15] : memref<33x128xf32, #tpu.memory_space<vmem>>, vector<1x128xf32>
    %c0_16 = arith.constant 0 : index
    %c0_17 = arith.constant 0 : index
    %50 = vector.load %arg2[%c0_16, %c0_17] : memref<33x128xf32, #tpu.memory_space<vmem>>, vector<1x128xf32>
    %51 = arith.subf %49, %50 : vector<1x128xf32>
    %c11 = arith.constant 11 : index
    %c0_18 = arith.constant 0 : index
    %52 = vector.load %arg2[%c11, %c0_18] : memref<33x128xf32, #tpu.memory_space<vmem>>, vector<1x128xf32>
    %c1 = arith.constant 1 : index
    %c0_19 = arith.constant 0 : index
    %53 = vector.load %arg2[%c1, %c0_19] : memref<33x128xf32, #tpu.memory_space<vmem>>, vector<1x128xf32>
    %54 = arith.subf %52, %53 : vector<1x128xf32>
    %c12 = arith.constant 12 : index
    %c0_20 = arith.constant 0 : index
    %55 = vector.load %arg2[%c12, %c0_20] : memref<33x128xf32, #tpu.memory_space<vmem>>, vector<1x128xf32>
    %c2 = arith.constant 2 : index
    %c0_21 = arith.constant 0 : index
    %56 = vector.load %arg2[%c2, %c0_21] : memref<33x128xf32, #tpu.memory_space<vmem>>, vector<1x128xf32>
    %57 = arith.subf %55, %56 : vector<1x128xf32>
    %58 = arith.mulf %51, %51 : vector<1x128xf32>
    %59 = arith.mulf %54, %54 : vector<1x128xf32>
    %60 = arith.addf %58, %59 : vector<1x128xf32>
    %61 = arith.mulf %57, %57 : vector<1x128xf32>
    %62 = arith.addf %60, %61 : vector<1x128xf32>
    %63 = math.sqrt %62 : vector<1x128xf32>
    %cst_22 = arith.constant 0.000000e+00 : f32
    %64 = vector.broadcast %cst_22 : f32 to vector<1x128xf32>
    %65 = arith.subf %64, %63 : vector<1x128xf32>
    %66 = math.exp %65 : vector<1x128xf32>
    %c30 = arith.constant 30 : index
    %c0_23 = arith.constant 0 : index
    %67 = vector.load %arg2[%c30, %c0_23] : memref<33x128xf32, #tpu.memory_space<vmem>>, vector<1x128xf32>
    %cst_24 = arith.constant 0.000000e+00 : f32
    %68 = vector.broadcast %cst_24 : f32 to vector<1x128xf32>
    %69 = arith.maximumf %67, %68 : vector<1x128xf32>
    %70 = arith.mulf %67, %66 : vector<1x128xf32>
    %71 = arith.subf %69, %70 : vector<1x128xf32>
    %72 = math.absf %67 : vector<1x128xf32>
    %cst_25 = arith.constant 0.000000e+00 : f32
    %73 = vector.broadcast %cst_25 : f32 to vector<1x128xf32>
    %74 = arith.subf %73, %72 : vector<1x128xf32>
    %75 = math.exp %74 : vector<1x128xf32>
    %76 = math.log1p %75 : vector<1x128xf32>
    %77 = arith.addf %71, %76 : vector<1x128xf32>
    %78 = arith.mulf %77, %48 : vector<1x128xf32>
    %c31 = arith.constant 31 : index
    %c0_26 = arith.constant 0 : index
    %79 = vector.load %arg2[%c31, %c0_26] : memref<33x128xf32, #tpu.memory_space<vmem>>, vector<1x128xf32>
    %80 = arith.negf %79 : vector<1x128xf32>
    %81 = math.exp %80 : vector<1x128xf32>
    %cst_27 = arith.constant 1.000000e+00 : f32
    %82 = vector.broadcast %cst_27 : f32 to vector<1x128xf32>
    %83 = arith.addf %82, %81 : vector<1x128xf32>
    %84 = arith.divf %82, %83 : vector<1x128xf32>
    %cst_28 = arith.constant 0.000000e+00 : f32
    %85 = vector.broadcast %cst_28 : f32 to vector<1x128xf32>
    %86 = arith.cmpf ogt, %41, %85 : vector<1x128xf32>
    %cst_29 = arith.constant 1.000000e+00 : f32
    %87 = vector.broadcast %cst_29 : f32 to vector<1x128xf32>
    %88 = arith.subf %87, %84 : vector<1x128xf32>
    %89 = arith.select %86, %84, %88 : vector<1x128xi1>, vector<1x128xf32>
    %cst_30 = arith.constant 9.99999996E-13 : f32
    %90 = vector.broadcast %cst_30 : f32 to vector<1x128xf32>
    %91 = arith.addf %89, %90 : vector<1x128xf32>
    %cst_31 = arith.constant 1.000000e+00 : f32
    %92 = vector.broadcast %cst_31 : f32 to vector<1x128xf32>
    %93 = arith.subf %92, %84 : vector<1x128xf32>
    %94 = arith.select %86, %93, %84 : vector<1x128xi1>, vector<1x128xf32>
    %95 = math.log %91 : vector<1x128xf32>
    %cst_32 = arith.constant 0.000000e+00 : f32
    %96 = vector.broadcast %cst_32 : f32 to vector<1x128xf32>
    %97 = arith.subf %96, %95 : vector<1x128xf32>
    %98 = arith.mulf %94, %94 : vector<1x128xf32>
    %99 = arith.mulf %97, %98 : vector<1x128xf32>
    %100 = arith.mulf %99, %48 : vector<1x128xf32>
    %101 = tpu.concatenate %38, %78, %100 in 0 : vector<1x128xf32>, vector<1x128xf32>, vector<1x128xf32> -> vector<3x128xf32>
    %cst_33 = arith.constant dense<0.000000e+00> : vector<3xf32>
    %102 = vector.multi_reduction <add>, %101, %cst_33 [1] : vector<3x128xf32> to vector<3xf32>
    %103 = vector.shape_cast %102 : vector<3xf32> to vector<3x1xf32>
    %c0_34 = arith.constant 0 : index
    %104 = memref.load %arg1[%c0_34] : memref<1xf32, #tpu.memory_space<smem>>
    %cst_35 = arith.constant 1.000000e+00 : f32
    %105 = arith.divf %cst_35, %104 : f32
    %106 = tpu.iota {dimensions = array<i32: 0>} : vector<3x1xi32>
    %c0_i32_36 = arith.constant 0 : i32
    %107 = vector.broadcast %c0_i32_36 : i32 to vector<3x1xi32>
    %108 = arith.cmpi eq, %106, %107 : vector<3x1xi32>
    %c1_i32 = arith.constant 1 : i32
    %109 = vector.broadcast %c1_i32 : i32 to vector<3x1xi32>
    %110 = arith.cmpi eq, %106, %109 : vector<3x1xi32>
    %cst_37 = arith.constant 1.000000e+00 : f32
    %cst_38 = arith.constant 1.000000e+00 : f32
    %111 = vector.broadcast %cst_37 : f32 to vector<3x1xf32>
    %112 = vector.broadcast %cst_38 : f32 to vector<3x1xf32>
    %113 = arith.select %110, %111, %112 : vector<3x1xi1>, vector<3x1xf32>
    %cst_39 = arith.constant 2.500000e-01 : f32
    %114 = vector.broadcast %cst_39 : f32 to vector<3x1xf32>
    %115 = arith.select %108, %114, %113 : vector<3x1xi1>, vector<3x1xf32>
    %116 = vector.broadcast %105 : f32 to vector<3x1xf32>
    %117 = arith.mulf %115, %116 : vector<3x1xf32>
    %118 = arith.mulf %103, %117 : vector<3x1xf32>
    %119 = vector.shape_cast %118 : vector<3x1xf32> to vector<1x3x1xf32>
    %c0_40 = arith.constant 0 : index
    %c0_41 = arith.constant 0 : index
    %c0_42 = arith.constant 0 : index
    %120 = vector.load %arg3[%c0_40, %c0_41, %c0_42] : memref<1x3x1xf32, #tpu.memory_space<vmem>>, vector<1x3x1xf32>
    tpu.vector_store %arg3[%c0_40, %c0_41, %c0_42], %119 {strides = array<i32>} : memref<1x3x1xf32, #tpu.memory_space<vmem>>, vector<1x3x1xf32>,
    return
  }
  func.func @transform_0(%arg0: i32, %arg1: memref<1xf32, #tpu.memory_space<smem>>) -> (i32, i32) {
    %c0_i32 = arith.constant 0 : i32
    %c0_i32_0 = arith.constant 0 : i32
    %c0_i32_1 = arith.constant 0 : i32
    return %c0_i32, %c0_i32_0 : i32, i32
  }
  func.func @transform_1(%arg0: i32, %arg1: memref<1xf32, #tpu.memory_space<smem>>) -> (i32, i32, i32) {
    %c0_i32 = arith.constant 0 : i32
    %c0_i32_0 = arith.constant 0 : i32
    %c0_i32_1 = arith.constant 0 : i32
    %c0_i32_2 = arith.constant 0 : i32
    return %c0_i32, %c0_i32_0, %c0_i32_1 : i32, i32, i32
  }
}

</mosaic_0001>

<bundles_post_ra>
// kernel: sparse_box3d_loss.1
= control target key start
LH: loop header
LB: loop body
LE: loop exit
PB: predicated region body
PF: predicated region fallthrough
CT: control target
= control target key end

     0   :  { %vm22_vm0 = vcmask 1041408   ;;  %vm133_vm9 = vcmask 1040384   ;;  %vm136_vm10 = vcmask 1042432   ;;  %vm151_vm12 = vcmask 2048   ;;  %s282_s0 = inlined_call_operand.<no memory space> [shape: f32[1], index: 0, kind: input, shape index: {}]   ;;  %s283_s1 = inlined_call_operand.vmem [shape: f32[33,128], index: 1, kind: input, shape index: {}]   ;;  %s284_s2 = inlined_call_operand.vmem [shape: f32[1,3,1], index: 2, kind: output, shape index: {}]  }
   0x1   :  { %v141_v0 = vstv %s282_s0  ;;  %v66_v1 = vld [vmem:[%s283_s1 + $0xa] sm:$0x1]  ;;  %v67_v2 = vld [vmem:[%s283_s1] sm:$0x1]  ;;  %v69_v3 = vld [vmem:[%s283_s1 + $0xb] sm:$0x1] }
   0x2   :  { %163 = vrcp.f32 %v141_v0  ;;  %v70_v4 = vld [vmem:[%s283_s1 + $0x1] sm:$0x1]  ;;  %v68_v5 = vsub.f32 %v66_v1, %v67_v2  ;;  %v72_v6 = vld [vmem:[%s283_s1 + $0xc] sm:$0x1]  ;;  %v73_v7 = vld [vmem:[%s283_s1 + $0x2] sm:$0x1] }
   0x3   :  { %v71_v8 = vsub.f32 %v69_v3, %v70_v4  ;;  %v74_v9 = vsub.f32 %v72_v6, %v73_v7  ;;  %v220_v10 = vld [vmem:[%s283_s1 + $0x1e] sm:$0x1]  ;;  %v109_v11 = vld [vmem:[%s283_s1 + $0x1f] sm:$0x1]  ;;  %v11_v13 = vld [vmem:[%s283_s1 + $0x8] sm:$0x3]  ;;  %v61_v7 = vlaneseq }
   0x4   :  { %v13_v14 = vld [vmem:[%s283_s1 + $0x12] sm:$0x3]  ;;  %v75_v15 = vmul.f32 %v68_v5, %v68_v5  ;;  %v94_v16 = vand.u32 2147483647, %v220_v10  ;;  %v158_v19 = vmul.f32 -1.442695, %v109_v11 }
   0x5   :  { %v76_v17 = vmul.f32 %v71_v8, %v71_v8  ;;  %v78_v18 = vmul.f32 %v74_v9, %v74_v9  ;;  %v10_v21 = vld [vmem:[%s283_s1] sm:$0xff]  ;;  %v12_v22 = vld [vmem:[%s283_s1 + $0xa] sm:$0xff]  ;;  %v17_v23 = vsub.f32 %v11_v13, %v13_v14  ;;  %v15_v33 = vld [vmem:[%s283_s1 + $0x1c] sm:$0x3] }
   0x6   :  { %v95_v20 = vsub.f32 0.0, %v94_v16  ;;  %165 = vpow2.f32 %v158_v19  ;;  %v31_v26 = vld [vmem:[%s283_s1 + $0x6] sm:$0x1]  ;;  %v16_v28 = vsub.f32 %v10_v21, %v12_v22  ;;  %v32_v29 = vld [vmem:[%s283_s1 + $0x7] sm:$0x1]  ;;  %v14_v37 = vld [vmem:[%s283_s1 + $0x14] sm:$0xff] }
   0x7   :  { %v77_v24 = vadd.f32 %v76_v17, %v75_v15  ;;  %v33_v30 = vld [vmem:[%s283_s1 + $0x10] sm:$0x1]  ;;  %v34_v31 = vld [vmem:[%s283_s1 + $0x11] sm:$0x1]  ;;  %v19_v32 = vand.u32 2147483647, %v17_v23 }
   0x8   :  { %v96_v25 = vmul.f32 1.442695, %v95_v20  ;;  %v35_v34 = vmul.f32 %v33_v30, %v31_v26  ;;  %v36_v35 = vmul.f32 %v34_v31, %v32_v29  ;;  %v18_v36 = vand.u32 2147483647, %v16_v28  ;;  %v40_v41 = vld [vmem:[%s283_s1 + $0x20] sm:$0x1] }
   0x9   :  { %v79_v27 = vadd.f32 %v78_v18, %v77_v24  ;;  %v21_v38 = vmul.f32 %v19_v32, %v15_v33  ;;  %vm41_vm1 = vcmp.gt.f32.partialorder %v40_v41, 0.5  ;;  %v44_v54 = vadd.f32 %v33_v30, %v31_v26  ;;  %v38_v17 = vld [vmem:[%s283_s1 + $0x1a] sm:$0x1]  ;;  %v39_v18 = vld [vmem:[%s283_s1 + $0x1b] sm:$0x1] }
   0xa   :  { %167 = vpow2.f32 %v96_v25  ;;  %v37_v40 = vadd.f32 %v36_v35, %v35_v34  ;;  %v20_v42 = vmul.f32 %v18_v36, %v14_v37  ;;  %v46_v55 = vsub.f32 %v31_v26, %v33_v30 }
   0xb   :  { %169 = vrsqrt.f32 %v79_v27  ;;  %v23_v44 = vsel %vm22_vm0, %v21_v38, 0.0  ;;  %vm82_vm3 = vcmp.eq.f32.partialorder %v79_v27, inf  ;;  %v85_v47 = vand.u32 2147483648, %v79_v27 }
   0xc   :  { %v164_v12 = vpop.eup %163  ;;  %vm42_vm2 = vcmp.lt.f32.partialorder %v37_v40, 0.0  ;;  %v24_v49 = vadd.f32 %v23_v44, %v20_v42  ;;  %vm84_vm4 = vcmp.eq.f32.partialorder %v79_v27, 0.0  ;;  %v59_v51 = vsub.f32 0.0, %v37_v40 }
   0xd   :  { %159 = vpush %v164_v12  ;;  %vm260_vm5 = vmand %vm41_vm1, %vm42_vm2  ;;  %v50_v59 = vadd.f32 %v34_v31, %v32_v29  ;;  %v52_v60 = vsub.f32 %v32_v29, %v34_v31  ;;  %v45_v63 = vand.u32 2147483647, %v44_v54  ;;  %v47_v0 = vand.u32 2147483647, %v46_v55 }
   0xe   :  { %v25_v57 = vrot.slane %v24_v49, 4  ;;  %v60_v61 = vsel %vm260_vm5, %v59_v51, %v37_v40  ;;  %v62_v19 = vand.u32 127, %v61_v7  ;;  %v91_v25 = vmax.f32 %v220_v10, 0.0 }
   0xf   :  { %vm116_vm6 = vcmp.gt.f32.partialorder %v60_v61, 0.0  ;;  %v51_v4 = vand.u32 2147483647, %v50_v59  ;;  %v53_v5 = vand.u32 2147483647, %v52_v60  ;;  %v48_v14 = vsub.f32 %v45_v63, %v47_v0 }
  0x10   :  { %v166_v39 = vpop.eup %165  ;;  %v26_v2 = vadd.f32 %v25_v57, %v24_v49  ;;  %vm63_vm8 = vcmp.lt.s32.totalorder %v62_v19, 16  ;;  %v179_v32 = vmov 0.0   ;;  %v180_v51 = vmov 1.0  }
  0x11   :  { %v113_v43 = vadd.f32 1.0, %v166_v39  ;;  %v54_v15 = vsub.f32 %v51_v4, %v53_v5  ;;  %v49_v23 = vmul.f32 %v48_v14, %v38_v17  ;;  %v157_v33 = vsel %vm63_vm8, 1.0, %v179_v32 }
  0x12   :  { %v27_v9 = vrot.slane %v26_v2, 2 }
  0x13   :  { %171 = vrcp.f32 %v113_v43  ;;  %v55_v24 = vmul.f32 %v54_v15, %v39_v18 }
  0x14   :  { %v168_v45 = vpop.eup %167  ;;  %v28_v20 = vadd.f32 %v27_v9, %v26_v2 }
  0x15   :  { %v170_v46 = vpop.eup %169  ;;  %v98_v48 = vadd.f32 1.0, %v168_v45  ;;  %v101_v3 = vmul.f32 -0.5, %v168_v45  ;;  %v104_v16 = vand.u32 2147483647, %v168_v45  ;;  %v56_v30 = vadd.f32 %v55_v24, %v49_v23 }
  0x16   :  { %v81_v50 = vmul.f32 %v170_v46, %v79_v27  ;;  %v29_v28 = vrot.slane %v28_v20, 1 }
  0x17   :  { %173 = vlog2.f32 %v98_v48  ;;  %v102_v11 = vadd.f32 1.0, %v101_v3  ;;  %vm105_vm7 = vcmp.lt.f32.partialorder %v104_v16, 0.0004427343  ;;  %v57_v38 = vsel %vm260_vm5, %v56_v30, 0.0 }
  0x18   :  { %v83_v53 = vsel %vm82_vm3, %v79_v27, %v81_v50  ;;  %v30_v37 = vadd.f32 %v29_v28, %v28_v20  ;;  %v145_v50 = vshrl.u32 %v61_v7, 7 }
  0x19   :  { %v86_v56 = vsel %vm84_vm4, %v85_v47, %v83_v53  ;;  %v103_v22 = vmul.f32 %v168_v45, %v102_v11 }
  0x1a   :  { %v87_v58 = vsub.f32 0.0, %v86_v56  ;;  %v58_v43 = vadd.f32 %v57_v38, %v30_v37  ;;  %vm146_vm11 = vcmp.eq.s32.totalorder %v145_v50, 0 }
  0x1b   :  { %v147_v52 = vsel %vm146_vm11, 0.25, %v180_v51 }
  0x1c   :  { %v88_v62 = vmul.f32 1.442695, %v87_v58 }
  0x1d   :  { %v172_v1 = vpop.eup %171 }
  0x1e   :  { %175 = vpow2.f32 %v88_v62  ;;  %v117_v6 = vsub.f32 1.0, %v172_v1 }
  0x20   :  { %v118_v8 = vsel %vm116_vm6, %v172_v1, %v117_v6  ;;  %v120_v34 = vsel %vm116_vm6, %v117_v6, %v172_v1 }
  0x21   :  { %v119_v12 = vadd.f32 1e-12, %v118_v8  ;;  %v174_v13 = vpop.eup %173  ;;  %v124_v41 = vmul.f32 %v120_v34, %v120_v34 }
  0x22   :  { %v100_v21 = vmul.f32 0.6931472, %v174_v13 }
  0x23   :  { %177 = vlog2.f32 %v119_v12 }
  0x24   :  { %v106_v29 = vsel %vm105_vm7, %v103_v22, %v100_v21 }
  0x28   :  { %v176_v26 = vpop.eup %175 }
  0x29   :  { %v92_v27 = vmul.f32 %v176_v26, %v220_v10 }
  0x2b   :  { %v93_v31 = vsub.f32 %v91_v25, %v92_v27 }
  0x2d   :  { %v107_v35 = vadd.f32 %v106_v29, %v93_v31  ;;  %v178_v36 = vpop.eup %177 }
  0x2e   :  { %v122_v40 = vmul.f32 0.6931472, %v178_v36 }
  0x2f   :  { %v108_v39 = vmul.f32 %v157_v33, %v107_v35 }
  0x30   :  { %v123_v42 = vsub.f32 0.0, %v122_v40 }
  0x31   :  { %v128_v10 = vrot.slane %v108_v39, 7 }
  0x32   :  { %v125_v44 = vmul.f32 %v124_v41, %v123_v42 }
  0x33   :  { %v134_v46 = vsel %vm133_vm9, %v58_v43, %v128_v10 }
  0x34   :  { %v126_v45 = vmul.f32 %v157_v33, %v125_v44 }
  0x36   :  { %v131_v47 = vrot.slane %v126_v45, 6 }
  0x38   :  { %v135_v48 = vsel %vm22_vm0, %v134_v46, %v131_v47 }
  0x39   :  { %v137_v49 = vsel %vm136_vm10, %v135_v48, 0.0 }
  0x3a   :  { %138 = vadd.xlane.f32.xlu0 %v137_v49 }
  0x3e   :  { %s160_s1 = spop %159 }
  0x3f   :  { %v148_v53 = vstv %s160_s1 }
  0x40   :  { %v149_v54 = vmul.f32 %v148_v53, %v147_v52 }
  0xc7   :  { %v139_v55 = vpop.xlane.xlu0 %138 }
  0xc8   :  { %v150_v56 = vmul.f32 %v149_v54, %v139_v55 }
  0xca   :  { %152 = vst.msk [vmem:[%s284_s2] sm:$0x7] %vm151_vm12, %v150_v56 }

</bundles_post_ra>
